<compile_context>
chip_gen: v7x
topology: tpu7x:2x2x1
jax: 0.10.0
libtpu: 0.0.40
codegen_flags: <defaults>
</compile_context>

<pallas_src>
import functools

import jax
import jax.numpy as jnp
from jax import lax
from jax.experimental import pallas as pl
from jax.experimental.pallas import tpu as pltpu


# ---------------------------------------------------------------------------
# Pass 1: fused QKV projection (softmax scale pre-folded into the Q weight).
# ---------------------------------------------------------------------------
def _qkv_proj_kernel(x_ref, w_ref, q_ref, k_ref, v_ref, *, d_out_p):
    # (blk, d_in) @ (d_in, 3*d_out_p) -> f32 accumulation on the MXU.
    qkv = jnp.dot(x_ref[...], w_ref[...], preferred_element_type=jnp.float32)
    # Lane-aligned static slices (d_out_p is a multiple of 128); store bf16.
    q_ref[...] = qkv[:, :d_out_p].astype(q_ref.dtype)
    k_ref[...] = qkv[:, d_out_p:2 * d_out_p].astype(k_ref.dtype)
    v_ref[...] = qkv[:, 2 * d_out_p:].astype(v_ref.dtype)


# ---------------------------------------------------------------------------
# Pass 2: flash-style attention with online softmax over the kv axis.
# ---------------------------------------------------------------------------
def _flash_attn_kernel(q_ref, k_ref, v_ref, o_ref, m_sc, l_sc, acc_sc,
                       *, seq_len, block_k, masked):
    j = pl.program_id(1)

    @pl.when(j == 0)
    def _init():
        m_sc[...] = jnp.full(m_sc.shape, -jnp.inf, dtype=m_sc.dtype)
        l_sc[...] = jnp.zeros(l_sc.shape, dtype=l_sc.dtype)
        acc_sc[...] = jnp.zeros(acc_sc.shape, dtype=acc_sc.dtype)

    # Scores: bf16 x bf16 -> f32, contracting the feature dim (no k transpose).
    s = lax.dot_general(q_ref[...], k_ref[...], (((1,), (1,)), ((), ())),
                        preferred_element_type=jnp.float32)      # (tq, tk) f32

    if masked:  # static Python flag: only emitted when sequence padding exists
        col = lax.broadcasted_iota(jnp.int32, s.shape, 1) + j * block_k
        s = jnp.where(col < seq_len, s, -1e30)

    # Online softmax with deferred normalization (all f32).
    m_prev = m_sc[...]
    m_new = jnp.maximum(m_prev, jnp.max(s, axis=-1, keepdims=True))
    alpha = jnp.exp(m_prev - m_new)
    p = jnp.exp(s - m_new)
    l_sc[...] = alpha * l_sc[...] + jnp.sum(p, axis=-1, keepdims=True)
    acc_sc[...] = alpha * acc_sc[...] + jnp.dot(
        p.astype(jnp.bfloat16), v_ref[...], preferred_element_type=jnp.float32)
    m_sc[...] = m_new

    @pl.when(j == pl.num_programs(1) - 1)
    def _finalize():
        inv_l = pl.reciprocal(l_sc[...], approx=True)   # EUP slot, ~free
        o_ref[...] = (acc_sc[...] * inv_l).astype(o_ref.dtype)


def self_attention(x, w_query, w_key, w_value):
    """x: (S, d_in) f32.  w_*: (d_out, d_in) as in nn.Linear.weight (no bias)."""
    S, d_in = x.shape
    d_out = w_query.shape[0]

    # Matches `attention_weights / key.shape[1] ** 5` (static at trace time).
    scale = 1.0 / float(d_out) ** 5

    # Lane-dense projection width (multiple of 128).
    d_out_p = ((d_out + 127) // 128) * 128

    # Tile size: 256 fills the 256x256 MXU on v6e/v7x; 128 for short sequences
    # (still MXU-native on v5e's 128x128 units).
    blk = 256 if S >= 256 else 128
    S_pad = ((S + blk - 1) // blk) * blk      # pad + mask instead of (S,S) tile
    masked = S_pad != S

    def _prep(w, s=1.0):  # (d_out, d_in) -> (d_in, d_out_p), zero-padded cols
        wt = jnp.asarray(w, jnp.float32).T * s
        return jnp.pad(wt, ((0, 0), (0, d_out_p - d_out)))

    # Fused, pre-transposed QKV weight; the softmax scale is folded into the
    # Q columns so no per-element scaling is needed inside the kernels.
    w_qkv = jnp.concatenate(
        [_prep(w_query, scale), _prep(w_key), _prep(w_value)], axis=1
    ).astype(jnp.bfloat16)

    x_f32 = jnp.asarray(x, jnp.float32)
    if masked:
        x_f32 = jnp.pad(x_f32, ((0, S_pad - S), (0, 0)))
    x_bf16 = x_f32.astype(jnp.bfloat16)

    # ---- Pass 1: QKV projection, once per row tile (hoisted out of the
    # (i, j) attention loop; previously K/V were recomputed per query tile).
    q, k, v = pl.pallas_call(
        functools.partial(_qkv_proj_kernel, d_out_p=d_out_p),
        out_shape=[jax.ShapeDtypeStruct((S_pad, d_out_p), jnp.bfloat16)] * 3,
        grid_spec=pltpu.PrefetchScalarGridSpec(
            num_scalar_prefetch=0,
            grid=(S_pad // blk,),
            in_specs=[
                pl.BlockSpec((blk, d_in), lambda i: (i, 0)),
                # Weight block index never changes -> stays VMEM-resident.
                # (If a VMEM-tight v7x config needed it, this spec could take
                #  pipeline_mode=pl.Buffered(1) to drop the second buffer.)
                pl.BlockSpec((d_in, 3 * d_out_p), lambda i: (0, 0)),
            ],
            out_specs=[pl.BlockSpec((blk, d_out_p), lambda i: (i, 0))] * 3,
        ),
        compiler_params=pltpu.CompilerParams(
            dimension_semantics=("parallel",)),
    )(x_bf16, w_qkv)

    # ---- Pass 2: flash attention.  Per-step VMEM footprint (worst case
    # blk=256, per 128 lanes of d_out_p): bf16 q/k/v tiles + f32 acc/out is a
    # few hundred KiB — far below the 16/32 MiB scoped defaults on v5e/v6e/v7x,
    # so no vmem_limit_bytes override is required even on v7x's 64 MiB VMEM.
    kernel = functools.partial(
        _flash_attn_kernel, seq_len=S, block_k=blk, masked=masked)
    out_padded = pl.pallas_call(
        kernel,
        out_shape=jax.ShapeDtypeStruct((S_pad, d_out_p), jnp.float32),
        grid_spec=pltpu.PrefetchScalarGridSpec(
            num_scalar_prefetch=0,
            grid=(S_pad // blk, S_pad // blk),
            in_specs=[
                # q tile: constant across j, resident for the whole kv sweep.
                pl.BlockSpec((blk, d_out_p), lambda i, j: (i, 0)),
                # k/v tiles cycle fastest: triple-buffer to hide their DMA
                # behind the two MXU matmuls per step.
                pl.BlockSpec((blk, d_out_p), lambda i, j: (j, 0),
                             pipeline_mode=pl.Buffered(3)),
                pl.BlockSpec((blk, d_out_p), lambda i, j: (j, 0),
                             pipeline_mode=pl.Buffered(3)),
            ],
            out_specs=pl.BlockSpec((blk, d_out_p), lambda i, j: (i, 0)),
            scratch_shapes=[
                pltpu.VMEM((blk, 1), jnp.float32),        # running max
                pltpu.VMEM((blk, 1), jnp.float32),        # running denom
                pltpu.VMEM((blk, d_out_p), jnp.float32),  # running context
            ],
        ),
        compiler_params=pltpu.CompilerParams(
            # TODO(synk): on v7x, if xprof shows one TensorCore idle, switch
            # axis 0 to pltpu.CORE_PARALLEL to shard query tiles across cores.
            dimension_semantics=("parallel", "arbitrary"),
        ),
    )(q, k, v)

    # Strip padding only when it exists (skip the extra HBM round trip when
    # S and d_out are already lane/tile aligned).
    if masked or d_out_p != d_out:
        return out_padded[:S, :d_out]
    return out_padded


def _reference(x, w_query, w_key, w_value):
    q = x @ w_query.T
    k = x @ w_key.T
    v = x @ w_value.T
    s = (q @ k.T) / float(k.shape[1]) ** 5
    a = jax.nn.softmax(s, axis=-1)
    return a @ v


if __name__ == "__main__":
    key = jax.random.PRNGKey(0)
    seq, d_in, d_out = 8, 32, 16

    kx, kq, kk, kv = jax.random.split(key, 4)
    x = jax.random.normal(kx, (seq, d_in), dtype=jnp.float32)
    # Deterministic synthetic "nn.Linear" weights, shape (d_out, d_in), no bias.
    bound = 1.0 / (d_in ** 0.5)
    w_query = jax.random.uniform(kq, (d_out, d_in), jnp.float32, -bound, bound)
    w_key = jax.random.uniform(kk, (d_out, d_in), jnp.float32, -bound, bound)
    w_value = jax.random.uniform(kv, (d_out, d_in), jnp.float32, -bound, bound)

    out = jax.block_until_ready(self_attention(x, w_query, w_key, w_value))

    ref = _reference(x, w_query, w_key, w_value)
    assert out.shape == (seq, d_out)
    err = float(jnp.max(jnp.abs(out - ref)))
    # bf16 matmul operands + approx reciprocal => relaxed (but meaningful) tol.
    assert jnp.allclose(out, ref, atol=3e-2, rtol=3e-2), (
        f"mismatch vs reference (max abs err {err})")

    print("KERNEL_OK")
</pallas_src>

<mosaic_0001>
module attributes {stable_mosaic.version = 11 : i64} {
  func.func @_qkv_proj_kernel(%arg0: i32, %arg1: memref<128x32xbf16, #tpu.memory_space<vmem>>, %arg2: memref<32x384xbf16, #tpu.memory_space<vmem>>, %arg3: memref<128x128xbf16, #tpu.memory_space<vmem>>, %arg4: memref<128x128xbf16, #tpu.memory_space<vmem>>, %arg5: memref<128x128xbf16, #tpu.memory_space<vmem>>) attributes {dimension_semantics = [#tpu.dimension_semantics<parallel>], iteration_bounds = array<i64: 1>, scalar_prefetch = 0 : i64, scratch_operands = 0 : i64, tpu.core_type = #tpu.core_type<tc>, window_params = [{transform_indices = @transform_0, window_bounds = array<i64: 128, 32>}, {pipeline_mode = #tpu.pipeline_mode<synchronous>, transform_indices = @transform_1, window_bounds = array<i64: 32, 384>}, {transform_indices = @transform_2, window_bounds = array<i64: 128, 128>}, {transform_indices = @transform_3, window_bounds = array<i64: 128, 128>}, {transform_indices = @transform_4, window_bounds = array<i64: 128, 128>}]} {
    %c0 = arith.constant 0 : index
    %c0_0 = arith.constant 0 : index
    %0 = vector.load %arg1[%c0, %c0_0] : memref<128x32xbf16, #tpu.memory_space<vmem>>, vector<128x32xbf16>
    %c0_1 = arith.constant 0 : index
    %c0_2 = arith.constant 0 : index
    %1 = vector.load %arg2[%c0_1, %c0_2] : memref<32x384xbf16, #tpu.memory_space<vmem>>, vector<32x384xbf16>
    %cst = arith.constant dense<0.000000e+00> : vector<128x384xf32>
    %2 = tpu.matmul %0, %1, %cst {dimension_numbers = #tpu.dot_dimension_numbers<[1], [0], [0], [1], [0, 0, 1, 1], [], []>} : vector<128x32xbf16>, vector<32x384xbf16>, vector<128x384xf32> -> vector<128x384xf32>
    %3 = vector.extract_strided_slice %2 {offsets = [0, 0], sizes = [128, 128], strides = [1, 1]} : vector<128x384xf32> to vector<128x128xf32>
    %4 = arith.truncf %3 : vector<128x128xf32> to vector<128x128xbf16>
    %c0_3 = arith.constant 0 : index
    %c0_4 = arith.constant 0 : index
    %5 = vector.load %arg3[%c0_3, %c0_4] : memref<128x128xbf16, #tpu.memory_space<vmem>>, vector<128x128xbf16>
    tpu.vector_store %arg3[%c0_3, %c0_4], %4 {strides = array<i32>} : memref<128x128xbf16, #tpu.memory_space<vmem>>, vector<128x128xbf16>,
    %6 = vector.extract_strided_slice %2 {offsets = [0, 128], sizes = [128, 128], strides = [1, 1]} : vector<128x384xf32> to vector<128x128xf32>
    %7 = arith.truncf %6 : vector<128x128xf32> to vector<128x128xbf16>
    %c0_5 = arith.constant 0 : index
    %c0_6 = arith.constant 0 : index
    %8 = vector.load %arg4[%c0_5, %c0_6] : memref<128x128xbf16, #tpu.memory_space<vmem>>, vector<128x128xbf16>
    tpu.vector_store %arg4[%c0_5, %c0_6], %7 {strides = array<i32>} : memref<128x128xbf16, #tpu.memory_space<vmem>>, vector<128x128xbf16>,
    %9 = vector.extract_strided_slice %2 {offsets = [0, 256], sizes = [128, 128], strides = [1, 1]} : vector<128x384xf32> to vector<128x128xf32>
    %10 = arith.truncf %9 : vector<128x128xf32> to vector<128x128xbf16>
    %c0_7 = arith.constant 0 : index
    %c0_8 = arith.constant 0 : index
    %11 = vector.load %arg5[%c0_7, %c0_8] : memref<128x128xbf16, #tpu.memory_space<vmem>>, vector<128x128xbf16>
    tpu.vector_store %arg5[%c0_7, %c0_8], %10 {strides = array<i32>} : memref<128x128xbf16, #tpu.memory_space<vmem>>, vector<128x128xbf16>,
    return
  }
  func.func @transform_0(%arg0: i32) -> (i32, i32) {
    %c0_i32 = arith.constant 0 : i32
    %c0_i32_0 = arith.constant 0 : i32
    return %arg0, %c0_i32 : i32, i32
  }
  func.func @transform_1(%arg0: i32) -> (i32, i32) {
    %c0_i32 = arith.constant 0 : i32
    %c0_i32_0 = arith.constant 0 : i32
    %c0_i32_1 = arith.constant 0 : i32
    return %c0_i32, %c0_i32_0 : i32, i32
  }
  func.func @transform_2(%arg0: i32) -> (i32, i32) {
    %c0_i32 = arith.constant 0 : i32
    %c0_i32_0 = arith.constant 0 : i32
    return %arg0, %c0_i32 : i32, i32
  }
  func.func @transform_3(%arg0: i32) -> (i32, i32) {
    %c0_i32 = arith.constant 0 : i32
    %c0_i32_0 = arith.constant 0 : i32
    return %arg0, %c0_i32 : i32, i32
  }
  func.func @transform_4(%arg0: i32) -> (i32, i32) {
    %c0_i32 = arith.constant 0 : i32
    %c0_i32_0 = arith.constant 0 : i32
    return %arg0, %c0_i32 : i32, i32
  }
}

</mosaic_0001>

<bundles_post_ra>
// kernel: tpu_custom_call.1
= control target key start
LH: loop header
LB: loop body
LE: loop exit
PB: predicated region body
PF: predicated region fallthrough
CT: control target
= control target key end

     0   :  { %10 = vsyncpa [#allocation3], 0  ;;  %v1028_v2 = vmov 0   ;;  %vm113_vm0 = vcmask 261120   ;;  %s1176_s0 = inlined_call_operand.vmem [shape: bf16[128,32], index: 0, kind: input, shape index: {}]   ;;  %s1177_s1 = inlined_call_operand.vmem [shape: bf16[32,384], index: 1, kind: input, shape index: {}]   ;;  %s1178_s2 = inlined_call_operand.hbm [shape: bf16[128,128], index: 2, kind: output, shape index: {0}]   ;;  %s1179_s3 = inlined_call_operand.hbm [shape: bf16[128,128], index: 3, kind: output, shape index: {1}]   ;;  %s1180_s4 = inlined_call_operand.hbm [shape: bf16[128,128], index: 4, kind: output, shape index: {2}]  }
   0x1   :  { %v942_v0 = vld [vmem:[%s1177_s1 + $0x4] ss:$12 sps:$4 sm:$0xff]   ;;  %v944_v1 = vld [vmem:[%s1177_s1] ss:$12 sps:$4 sm:$0xff]   ;;  %170 = vmatprep.mubr.bf16.mxu0 %v1028_v2  ;;  %230 = vmatprep.mubr.bf16.mxu1 %v1028_v2  ;;  %v945_v3 = vld [vmem:[%s1177_s1 + $0x1c] ss:$12 sps:$4 sm:$0xff]  }
   0x2   :  { %138 = vmatprep.subr.bf16.mxu0 %v942_v0  ;;  %932 = vmatprep.subr.bf16.mxu1 %v942_v0  ;;  %v947_v4 = vld [vmem:[%s1177_s1 + $0x18] ss:$12 sps:$4 sm:$0xff]   ;;  %v950_v6 = vld [vmem:[%s1177_s1 + $0x8] ss:$12 sps:$4 sm:$0xff]   ;;  %v953_v8 = vld [vmem:[%s1177_s1 + $0x20] ss:$12 sps:$4 sm:$0xff]  }
   0x3   :  { %139 = vmatpush1.bf16.msra.mxu0 %v944_v1  ;;  %934 = vmatpush1.bf16.msra.mxu1 %v944_v1  ;;  %v948_v5 = vld [vmem:[%s1176_s0] sm:$0xff]   ;;  %v949_v7 = vld [vmem:[%s1176_s0 + $0x30] sm:$0xff]  }
   0x4   :  { %140 = vmatprep.subr.bf16.mxu0 %v945_v3  ;;  %933 = vmatprep.subr.bf16.mxu1 %v945_v3 }
   0x7   :  { %141 = vmatpush1.bf16.msra.mxu0 %v947_v4  ;;  %935 = vmatpush1.bf16.msra.mxu1 %v947_v4 }
   0x8   :  { %912 = vmatprep.subr.bf16.mxu1 %v950_v6 }
   0xa   :  { %649 = vmatmul.mubr.msk.bf16.vlgmr.msra.gmra.mrb[0].mxu0 %vm113_vm0, %v948_v5  ;;  %655 = vmatmul.mubr.msk.bf16.vlgmr.msra.gmra.mrb[0].mxu1 %vm113_vm0, %v949_v7 }
   0xb   :  { %913 = vmatpush3.bf16.msra.mxu1 %v950_v6  ;;  %180 = vmatprep.mubr.bf16.mxu0 %v1028_v2 }
   0xc   :  { %240 = vmatprep.mubr.bf16.mxu1 %v1028_v2  ;;  %914 = vmatprep.subr.bf16.mxu1 %v953_v8 }
   0xd   :  { %11 = vsyncpa [#allocation5], 0  ;;  %v951_v9 = vld [vmem:[%s1176_s0 + $0x8] sm:$0xff]   ;;  %v952_v10 = vld [vmem:[%s1176_s0 + $0x38] sm:$0xff]   ;;  %s1030_s17 = smov [#allocation4]   ;;  %s1031_s19 = smov [#allocation6]  }
   0xe   :  { %v954_v11 = vld [vmem:[%s1176_s0 + $0x10] sm:$0xff]   ;;  %v955_v12 = vld [vmem:[%s1176_s0 + $0x18] sm:$0xff]   ;;  %v956_v13 = vld [vmem:[%s1176_s0 + $0x20] sm:$0xff]   ;;  %s605_s18 = sshll.u32 %s1030_s17, 4  ;;  %s617_s20 = sshll.u32 %s1031_s19, 4  ;;  %s1117_s18 = int_to_ptr.vmem [resolvable:$true] %s605_s18  ;;  %s1119_s20 = int_to_ptr.vmem [resolvable:$true] %s617_s20 }
   0xf   :  { %915 = vmatpush3.bf16.msra.mxu1 %v953_v8  ;;  %v957_v14 = vld [vmem:[%s1176_s0 + $0x28] sm:$0xff]   ;;  %s1029_s0 = smov [#allocation2]  }
  0x10   :  { %s593_s16 = sshll.u32 %s1029_s0, 4  ;;  %s594_s16 = int_to_ptr.vmem [resolvable:$true] %s593_s16 }
  0x11   :  { %s958_s21 = scalar_lea.vmem %s594_s16, 1024  ;;  %p963_p1 = scmp.lt.s32.totalorder %s594_s16, %s594_s16 }
  0x12   :  { %650 = vmatmul.mubr.msk.bf16.gmra.mrb[4].mxu0 %vm113_vm0, %v951_v9  ;;  %656 = vmatmul.mubr.msk.bf16.gmra.mrb[4].mxu1 %vm113_vm0, %v952_v10  ;;  %p959_p0 = scmp.ne.s32.totalorder %s594_s16, %s958_s21  ;;  %p964_p2 = scmp.lt.s32.totalorder %s958_s21, %s958_s21 }
  0x13   :  { %190 = vmatprep.mubr.bf16.mxu0 %v1028_v2  ;;  %916 = vmatprep.mubr.msk.bf16.mxu1 %vm113_vm0, %v948_v5 }
  0x14   :  { %p965_p3 = por %p964_p2, %p963_p1 }
  0x16   :  { %p966_p4 = pnand %p965_p3, %p959_p0 }
  0x1a   :  { %651 = vmatmul.mubr.msk.bf16.gmra.mrb[8].mxu0 %vm113_vm0, %v954_v11  ;;  %917 = vmatmul.mubr.msk.bf16.vlgmr.msra.gmra.mrb[8].mxu1 %vm113_vm0, %v951_v9 }
  0x1b   :  { %200 = vmatprep.mubr.bf16.mxu0 %v1028_v2  ;;  %920 = vmatprep.mubr.msk.bf16.mxu1 %vm113_vm0, %v954_v11 }
  0x22   :  { %652 = vmatmul.mubr.msk.bf16.gmra.mrb[12].mxu0 %vm113_vm0, %v955_v12  ;;  %921 = vmatmul.mubr.msk.bf16.gmra.mrb[12].mxu1 %vm113_vm0, %v955_v12 }
  0x23   :  { %210 = vmatprep.mubr.bf16.mxu0 %v1028_v2  ;;  %924 = vmatprep.mubr.msk.bf16.mxu1 %vm113_vm0, %v956_v13 }
  0x2a   :  { %653 = vmatmul.mubr.msk.bf16.gmra.mrb[16].mxu0 %vm113_vm0, %v956_v13  ;;  %925 = vmatmul.mubr.msk.bf16.gmra.mrb[16].mxu1 %vm113_vm0, %v957_v14 }
  0x2b   :  { %220 = vmatprep.mubr.bf16.mxu0 %v1028_v2  ;;  %928 = vmatprep.mubr.msk.bf16.mxu1 %vm113_vm0, %v949_v7 }
  0x32   :  { %654 = vmatmul.mubr.msk.bf16.gmra.mrb[20].mxu0 %vm113_vm0, %v957_v14  ;;  %929 = vmatmul.mubr.msk.bf16.gmra.mrb[20].mxu1 %vm113_vm0, %v952_v10 }
  0xdd   :  { %v172_v15 = vpop.f32.mrb[0].mxu0  ;;  %v232_v16 = vpop.f32.mrb[0].mxu1 }
  0xde   :  { %v174_v17 = vpop.f32.mrb[1].mxu0  ;;  %v234_v18 = vpop.f32.mrb[1].mxu1 }
  0xdf   :  { %v176_v19 = vpop.f32.mrb[2].mxu0  ;;  %v236_v20 = vpop.f32.mrb[2].mxu1 }
  0xe0   :  { %v764_v21 = vpack.c.bf16 %v176_v19, %v172_v15  ;;  %v794_v22 = vpack.c.bf16 %v236_v20, %v232_v16  ;;  %v178_v23 = vpop.f32.mrb[3].mxu0  ;;  %v238_v24 = vpop.f32.mrb[3].mxu1 }
  0xe1   :  { %v804_v25 = vpack.c.bf16 %v178_v23, %v174_v17  ;;  %v834_v26 = vpack.c.bf16 %v238_v24, %v234_v18 }
  0xe2   :  { %765 = vst [vmem:[#allocation2] sm:$0xff] %v764_v21   ;;  %886 = vst [vmem:[#allocation2 + $0x30] sm:$0xff] %v794_v22  }
  0xe3   :  { %805 = vst [vmem:[#allocation4] sm:$0xff] %v804_v25   ;;  %893 = vst [vmem:[#allocation4 + $0x30] sm:$0xff] %v834_v26  }
  0xe5   :  { %v182_v27 = vpop.f32.mrb[4].mxu0  ;;  %v242_v28 = vpop.f32.mrb[4].mxu1 }
  0xe6   :  { %v184_v29 = vpop.f32.mrb[5].mxu0  ;;  %v244_v30 = vpop.f32.mrb[5].mxu1 }
  0xe7   :  { %v186_v31 = vpop.f32.mrb[6].mxu0  ;;  %v246_v32 = vpop.f32.mrb[6].mxu1 }
  0xe8   :  { %v769_v33 = vpack.c.bf16 %v186_v31, %v182_v27  ;;  %v799_v34 = vpack.c.bf16 %v246_v32, %v242_v28  ;;  %v188_v35 = vpop.f32.mrb[7].mxu0  ;;  %v248_v36 = vpop.f32.mrb[7].mxu1 }
  0xe9   :  { %v809_v37 = vpack.c.bf16 %v188_v35, %v184_v29  ;;  %v839_v38 = vpack.c.bf16 %v248_v36, %v244_v30 }
  0xea   :  { %881 = vst [vmem:[#allocation2 + $0x8] sm:$0xff] %v769_v33   ;;  %887 = vst [vmem:[#allocation2 + $0x38] sm:$0xff] %v799_v34  }
  0xeb   :  { %888 = vst [vmem:[#allocation4 + $0x8] sm:$0xff] %v809_v37   ;;  %894 = vst [vmem:[#allocation4 + $0x38] sm:$0xff] %v839_v38  }
  0xed   :  { %v192_v39 = vpop.f32.mrb[8].mxu0  ;;  %v918_v40 = vpop.f32.mrb[8].mxu1 }
  0xee   :  { %v194_v41 = vpop.f32.mrb[9].mxu0  ;;  %v285_v42 = vpop.f32.mrb[9].mxu1 }
  0xef   :  { %v196_v43 = vpop.f32.mrb[10].mxu0  ;;  %v919_v44 = vpop.f32.mrb[10].mxu1 }
  0xf0   :  { %v774_v45 = vpack.c.bf16 %v196_v43, %v192_v39  ;;  %v849_v46 = vpack.c.bf16 %v919_v44, %v918_v40  ;;  %v198_v47 = vpop.f32.mrb[11].mxu0  ;;  %v288_v48 = vpop.f32.mrb[11].mxu1 }
  0xf1   :  { %v814_v49 = vpack.c.bf16 %v198_v47, %v194_v41  ;;  %v844_v50 = vpack.c.bf16 %v288_v48, %v285_v42 }
  0xf2   :  { %882 = vst [vmem:[#allocation2 + $0x10] sm:$0xff] %v774_v45   ;;  %895 = vst [vmem:[#allocation6 + $0x8] sm:$0xff] %v849_v46  }
  0xf3   :  { %889 = vst [vmem:[#allocation4 + $0x10] sm:$0xff] %v814_v49   ;;  %845 = vst [vmem:[#allocation6] sm:$0xff] %v844_v50  }
  0xf5   :  { %v202_v51 = vpop.f32.mrb[12].mxu0  ;;  %v922_v52 = vpop.f32.mrb[12].mxu1 }
  0xf6   :  { %v204_v53 = vpop.f32.mrb[13].mxu0  ;;  %v301_v54 = vpop.f32.mrb[13].mxu1 }
  0xf7   :  { %v206_v55 = vpop.f32.mrb[14].mxu0  ;;  %v923_v56 = vpop.f32.mrb[14].mxu1 }
  0xf8   :  { %v779_v57 = vpack.c.bf16 %v206_v55, %v202_v51  ;;  %v859_v58 = vpack.c.bf16 %v923_v56, %v922_v52  ;;  %v208_v59 = vpop.f32.mrb[15].mxu0  ;;  %v304_v60 = vpop.f32.mrb[15].mxu1 }
  0xf9   :  { %v819_v61 = vpack.c.bf16 %v208_v59, %v204_v53  ;;  %v854_v62 = vpack.c.bf16 %v304_v60, %v301_v54 }
  0xfa   :  { %883 = vst [vmem:[#allocation2 + $0x18] sm:$0xff] %v779_v57   ;;  %897 = vst [vmem:[#allocation6 + $0x18] sm:$0xff] %v859_v58  }
  0xfb   :  { %890 = vst [vmem:[#allocation4 + $0x18] sm:$0xff] %v819_v61   ;;  %896 = vst [vmem:[#allocation6 + $0x10] sm:$0xff] %v854_v62  }
  0xfd   :  { %v212_v63 = vpop.f32.mrb[16].mxu0  ;;  %v926_v0 = vpop.f32.mrb[16].mxu1 }
  0xfe   :  { %v214_v1 = vpop.f32.mrb[17].mxu0  ;;  %v317_v2 = vpop.f32.mrb[17].mxu1 }
  0xff   :  { %v216_v3 = vpop.f32.mrb[18].mxu0  ;;  %v927_v4 = vpop.f32.mrb[18].mxu1 }
 0x100   :  { %v784_v5 = vpack.c.bf16 %v216_v3, %v212_v63  ;;  %v869_v6 = vpack.c.bf16 %v927_v4, %v926_v0  ;;  %v218_v7 = vpop.f32.mrb[19].mxu0  ;;  %v320_v8 = vpop.f32.mrb[19].mxu1 }
 0x101   :  { %v824_v9 = vpack.c.bf16 %v218_v7, %v214_v1  ;;  %v864_v10 = vpack.c.bf16 %v320_v8, %v317_v2 }
 0x102   :  { %884 = vst [vmem:[#allocation2 + $0x20] sm:$0xff] %v784_v5   ;;  %899 = vst [vmem:[#allocation6 + $0x28] sm:$0xff] %v869_v6  }
 0x103   :  { %891 = vst [vmem:[#allocation4 + $0x20] sm:$0xff] %v824_v9   ;;  %898 = vst [vmem:[#allocation6 + $0x20] sm:$0xff] %v864_v10  }
 0x105   :  { %v222_v11 = vpop.f32.mrb[20].mxu0  ;;  %v930_v12 = vpop.f32.mrb[20].mxu1 }
 0x106   :  { %v224_v13 = vpop.f32.mrb[21].mxu0  ;;  %v333_v14 = vpop.f32.mrb[21].mxu1 }
 0x107   :  { %v226_v15 = vpop.f32.mrb[22].mxu0  ;;  %v931_v16 = vpop.f32.mrb[22].mxu1 }
 0x108   :  { %v789_v17 = vpack.c.bf16 %v226_v15, %v222_v11  ;;  %v879_v18 = vpack.c.bf16 %v931_v16, %v930_v12  ;;  %v228_v19 = vpop.f32.mrb[23].mxu0  ;;  %v336_v20 = vpop.f32.mrb[23].mxu1 }
 0x109   :  { %v829_v21 = vpack.c.bf16 %v228_v19, %v224_v13  ;;  %v874_v22 = vpack.c.bf16 %v336_v20, %v333_v14 }
 0x10a   :  { %885 = vst [vmem:[#allocation2 + $0x28] sm:$0xff] %v789_v17   ;;  %901 = vst [vmem:[#allocation6 + $0x38] sm:$0xff] %v879_v18  }
 0x10b   :  { %892 = vst [vmem:[#allocation4 + $0x28] sm:$0xff] %v829_v21   ;;  %900 = vst [vmem:[#allocation6 + $0x30] sm:$0xff] %v874_v22  }
 0x10c   :  { %969 = shalt.err (!%p966_p4)
}
 0x10d   :  { %s970_s24 = scalar_lea.hbm %s1178_s2, 1024 }
 0x10e   :  { %p971_p5 = scmp.ne.s32.totalorder %s1178_s2, %s970_s24  ;;  %p974_p6 = scmp.lt.u32.totalorder %s970_s24, %s1178_s2 }
 0x110   :  { %p976_p7 = pnand %p974_p6, %p971_p5 }
 0x112   :  { %979 = shalt.err (!%p976_p7)
}
 0x113   :  { %s1032_s29 = smov 64   ;;  %s1033_s30 = smov 4  }
 0x114   :  { %599 = dma.vmem_to_hbm [thread:$0]  %s594_s16, 1024, %s1178_s2, [#allocation3], %s1032_s29, %s1032_s29, %s1033_s30  }
 0x115   :  { %s980_s7 = scalar_lea.vmem %s1117_s18, 1024  ;;  %p985_p9 = scmp.lt.s32.totalorder %s1117_s18, %s1117_s18 }
 0x116   :  { %p981_p8 = scmp.ne.s32.totalorder %s1117_s18, %s980_s7  ;;  %p986_p10 = scmp.lt.s32.totalorder %s980_s7, %s980_s7 }
 0x118   :  { %p987_p11 = por %p986_p10, %p985_p9 }
 0x11a   :  { %p988_p12 = pnand %p987_p11, %p981_p8 }
 0x11c   :  { %991 = shalt.err (!%p988_p12)
}
 0x11d   :  { %s992_s9 = scalar_lea.hbm %s1179_s3, 1024 }
 0x11e   :  { %p993_p13 = scmp.ne.s32.totalorder %s1179_s3, %s992_s9  ;;  %p996_p0 = scmp.lt.u32.totalorder %s992_s9, %s1179_s3 }
 0x120   :  { %p998_p1 = pnand %p996_p0, %p993_p13 }
 0x122   :  { %1001 = shalt.err (!%p998_p1)
}
 0x123   :  { %611 = dma.vmem_to_hbm [thread:$0]  %s1117_s18, 1024, %s1179_s3, [#allocation5], %s1032_s29, %s1032_s29, %s1033_s30  }
 0x124   :  { %s1002_s15 = scalar_lea.vmem %s1119_s20, 1024  ;;  %p1007_p3 = scmp.lt.s32.totalorder %s1119_s20, %s1119_s20 }
 0x125   :  { %p1003_p2 = scmp.ne.s32.totalorder %s1119_s20, %s1002_s15  ;;  %p1008_p4 = scmp.lt.s32.totalorder %s1002_s15, %s1002_s15 }
 0x127   :  { %p1009_p5 = por %p1008_p4, %p1007_p3 }
 0x129   :  { %p1010_p6 = pnand %p1009_p5, %p1003_p2 }
 0x12b   :  { %1013 = shalt.err (!%p1010_p6)
}
 0x12c   :  { %s1014_s17 = scalar_lea.hbm %s1180_s4, 1024 }
 0x12d   :  { %p1015_p7 = scmp.ne.s32.totalorder %s1180_s4, %s1014_s17  ;;  %p1018_p8 = scmp.lt.u32.totalorder %s1014_s17, %s1180_s4 }
 0x12f   :  { %p1020_p9 = pnand %p1018_p8, %p1015_p7 }
 0x131   :  { %1023 = shalt.err (!%p1020_p9)
}
 0x132   :  { %623 = dma.vmem_to_hbm [thread:$0]  %s1119_s20, 1024, %s1180_s4, [#allocation5], %s1032_s29, %s1032_s29, %s1033_s30  }
 0x133   :  { %1024 = dma.done.wait [#allocation3], 1024  }
 0x134   :  { %1025 = vsyncadd [#allocation3], 4294966272 }
 0x135   :  { %1026 = dma.done.wait [#allocation5], 2048  }
 0x136   :  { %1027 = vsyncadd [#allocation5], 4294965248 }
 0x137   :  { %633 = vsyncpa [#allocation3], 1 }
 0x138   :  { %634 = vsyncpa [#allocation5], 1 }

</bundles_post_ra>
